<compile_context>
chip_gen: v7x
topology: tpu7x:2x2x1
jax: 0.10.0
libtpu: 0.0.40
codegen_flags: <defaults>
</compile_context>

<pallas_src>
import functools

import jax
import jax.numpy as jnp
from jax import lax
from jax.experimental import pallas as pl
from jax.experimental.pallas import tpu as pltpu


NEG_SLOPE = 9.1  # matches nn.LeakyReLU(negative_slope=9.1) in the source model
# TODO(synk): negative_slope=9.1 (>1) is unusual but faithful to the module spec.


def _apply_act(y, act):
    if act == "LeakyReLU":
        return jnp.where(y >= 0.0, y, NEG_SLOPE * y)
    elif act == "SiLU":
        return y * jax.nn.sigmoid(y)  # sigmoid lowers to the EUP (free slot)
    else:
        raise NotImplementedError(f"unsupported activation: {act}")


def _blocks_kernel_single_k(x_ref, w_ref, b_ref, o_ref, *, act):
    # x_ref: (TM, D)  w_ref: (TN, D) [torch Linear layout]  b_ref: (1, TN)
    # o_ref: (TM, TN).  Whole reduction in one shot -> no scratch round-trip.
    y = lax.dot_general(
        x_ref[...], w_ref[...],
        dimension_numbers=(((1,), (1,)), ((), ())),
        preferred_element_type=jnp.float32)
    y = y + b_ref[...].astype(jnp.float32)
    o_ref[...] = _apply_act(y, act).astype(o_ref.dtype)


def _blocks_kernel_multi_k(x_ref, w_ref, b_ref, o_ref, acc_ref, *, act):
    # x_ref: (TM, TK)  w_ref: (TN, TK)  b_ref: (1, TN)
    # o_ref: (TM, TN)  acc_ref: (TM, TN) f32 scratch, resident across K steps.
    k = pl.program_id(2)

    @pl.when(k == 0)
    def _():
        acc_ref[...] = jnp.zeros_like(acc_ref)

    # Contract K on both operands: (TM, K) x (TN, K)^T -> (TM, TN) on the MXU,
    # consuming W^T directly (no wrapper transpose).
    acc_ref[...] += lax.dot_general(
        x_ref[...], w_ref[...],
        dimension_numbers=(((1,), (1,)), ((), ())),
        preferred_element_type=jnp.float32)

    @pl.when(k == pl.num_programs(2) - 1)
    def _():
        y = acc_ref[...] + b_ref[...].astype(jnp.float32)
        o_ref[...] = _apply_act(y, act).astype(o_ref.dtype)


def _round_up(n, m):
    return (n + m - 1) // m * m


def blocks_forward(x, w, b, act="LeakyReLU",
                   *, tm_pref=512, tn_pref=512, tk_pref=512):
    """x: (B, S, D); w: (H, D) [torch Linear layout]; b: (H,) -> (B, S, H)."""
    B, S, D = x.shape
    H = w.shape[0]
    M = B * S

    # --- tile plan -----------------------------------------------------------
    # M tile: multiple of 8 sublanes, capped at tm_pref.
    if M >= tm_pref:
        TM, Mp = tm_pref, _round_up(M, tm_pref)
    else:
        TM = _round_up(M, 8)
        Mp = TM
    # N tile: lane-dense (multiple of 128), capped at tn_pref.
    Hp = _round_up(H, 128)
    if Hp >= tn_pref:
        TN = tn_pref
        Hp = _round_up(Hp, TN)
    else:
        TN = Hp
    # K tile: only split the reduction when D is large; otherwise keep it whole.
    if D > tk_pref:
        TK, Dp = tk_pref, _round_up(D, tk_pref)
    else:
        TK, Dp = D, D

    # --- wrapper-side padding (zeros are neutral for the matmul) -------------
    x2 = x.reshape(M, D)
    if (Mp, Dp) != (M, D):
        x2 = jnp.pad(x2, ((0, Mp - M), (0, Dp - D)))
    w2 = w
    if (Hp, Dp) != (H, D):
        w2 = jnp.pad(w, ((0, Hp - H), (0, Dp - D)))
    b2 = b.reshape(1, H)
    if Hp != H:
        b2 = jnp.pad(b2, ((0, 0), (0, Hp - H)))

    k_steps = Dp // TK

    if k_steps == 1:
        # Fast path: whole reduction per tile, no accumulator scratch.
        grid = (Mp // TM, Hp // TN)
        out = pl.pallas_call(
            functools.partial(_blocks_kernel_single_k, act=act),
            out_shape=jax.ShapeDtypeStruct((Mp, Hp), x.dtype),
            grid_spec=pltpu.PrefetchScalarGridSpec(
                num_scalar_prefetch=0,
                grid=grid,
                in_specs=[
                    pl.BlockSpec((TM, TK), lambda i, j: (i, 0)),   # x tile
                    pl.BlockSpec((TN, TK), lambda i, j: (j, 0)),   # w tile (H,D)
                    pl.BlockSpec((1, TN), lambda i, j: (0, j)),    # bias tile
                ],
                out_specs=pl.BlockSpec((TM, TN), lambda i, j: (i, j)),
            ),
            compiler_params=pltpu.CompilerParams(
                dimension_semantics=("parallel", "parallel")),
        )(x2, w2, b2)
    else:
        grid = (Mp // TM, Hp // TN, k_steps)
        out = pl.pallas_call(
            functools.partial(_blocks_kernel_multi_k, act=act),
            out_shape=jax.ShapeDtypeStruct((Mp, Hp), x.dtype),
            grid_spec=pltpu.PrefetchScalarGridSpec(
                num_scalar_prefetch=0,
                grid=grid,
                in_specs=[
                    pl.BlockSpec((TM, TK), lambda i, j, k: (i, k)),   # x tile
                    pl.BlockSpec((TN, TK), lambda i, j, k: (j, k)),   # w tile
                    pl.BlockSpec((1, TN), lambda i, j, k: (0, j)),    # bias tile
                ],
                out_specs=pl.BlockSpec((TM, TN), lambda i, j, k: (i, j)),
                scratch_shapes=[pltpu.VMEM((TM, TN), jnp.float32)],
            ),
            compiler_params=pltpu.CompilerParams(
                dimension_semantics=("parallel", "parallel", "arbitrary")),
        )(x2, w2, b2)

    return out[:M, :H].reshape(B, S, H)


if __name__ == "__main__":
    # Small shapes consistent with the forward: x is (batch, seq, input_dim).
    B, S, D, H = 2, 8, 16, 32

    key = jax.random.PRNGKey(0)
    kx, kw, kb = jax.random.split(key, 3)

    x = jax.random.normal(kx, (B, S, D), dtype=jnp.float32)
    # Deterministic synthetic parameters (torch Linear shapes: W (H, D), b (H,))
    bound = 1.0 / jnp.sqrt(jnp.float32(D))
    w = jax.random.uniform(kw, (H, D), jnp.float32, -bound, bound)
    b = jax.random.uniform(kb, (H,), jnp.float32, -bound, bound)

    # LeakyReLU path
    out = blocks_forward(x, w, b, act="LeakyReLU")
    out = jax.block_until_ready(out)
    ref = x @ w.T + b
    ref = jnp.where(ref >= 0, ref, NEG_SLOPE * ref)
    assert out.shape == (B, S, H)
    assert jnp.allclose(out, ref, atol=1e-5, rtol=1e-5)

    # SiLU path
    out_s = blocks_forward(x, w, b, act="SiLU")
    out_s = jax.block_until_ready(out_s)
    ref_s = x @ w.T + b
    ref_s = ref_s * jax.nn.sigmoid(ref_s)
    assert jnp.allclose(out_s, ref_s, atol=1e-5, rtol=1e-5)

    print("KERNEL_OK")
</pallas_src>

<mosaic_0001>
module attributes {stable_mosaic.version = 11 : i64} {
  func.func @_blocks_kernel_single_k(%arg0: i32, %arg1: i32, %arg2: memref<16x16xf32, #tpu.memory_space<vmem>>, %arg3: memref<128x16xf32, #tpu.memory_space<vmem>>, %arg4: memref<1x128xf32, #tpu.memory_space<vmem>>, %arg5: memref<16x128xf32, #tpu.memory_space<vmem>>) attributes {dimension_semantics = [#tpu.dimension_semantics<parallel>, #tpu.dimension_semantics<parallel>], iteration_bounds = array<i64: 1, 1>, scalar_prefetch = 0 : i64, scratch_operands = 0 : i64, tpu.core_type = #tpu.core_type<tc>, window_params = [{transform_indices = @transform_0, window_bounds = array<i64: 16, 16>}, {transform_indices = @transform_1, window_bounds = array<i64: 128, 16>}, {transform_indices = @transform_2, window_bounds = array<i64: 1, 128>}, {transform_indices = @transform_3, window_bounds = array<i64: 16, 128>}]} {
    %c0 = arith.constant 0 : index
    %c0_0 = arith.constant 0 : index
    %0 = vector.load %arg2[%c0, %c0_0] : memref<16x16xf32, #tpu.memory_space<vmem>>, vector<16x16xf32>
    %c0_1 = arith.constant 0 : index
    %c0_2 = arith.constant 0 : index
    %1 = vector.load %arg3[%c0_1, %c0_2] : memref<128x16xf32, #tpu.memory_space<vmem>>, vector<128x16xf32>
    %cst = arith.constant dense<0.000000e+00> : vector<16x128xf32>
    %2 = tpu.matmul %0, %1, %cst {dimension_numbers = #tpu.dot_dimension_numbers<[1], [1], [0], [0], [0, 0, 1, 0], [], []>} : vector<16x16xf32>, vector<128x16xf32>, vector<16x128xf32> -> vector<16x128xf32>
    %c0_3 = arith.constant 0 : index
    %c0_4 = arith.constant 0 : index
    %3 = vector.load %arg4[%c0_3, %c0_4] : memref<1x128xf32, #tpu.memory_space<vmem>>, vector<1x128xf32>
    %4 = vector.broadcast %3 : vector<1x128xf32> to vector<16x128xf32>
    %5 = arith.addf %2, %4 : vector<16x128xf32>
    %cst_5 = arith.constant 0.000000e+00 : f32
    %6 = vector.broadcast %cst_5 : f32 to vector<16x128xf32>
    %7 = arith.cmpf oge, %5, %6 : vector<16x128xf32>
    %cst_6 = arith.constant 9.100000e+00 : f32
    %8 = vector.broadcast %cst_6 : f32 to vector<16x128xf32>
    %9 = arith.mulf %8, %5 : vector<16x128xf32>
    %10 = arith.select %7, %5, %9 : vector<16x128xi1>, vector<16x128xf32>
    %c0_7 = arith.constant 0 : index
    %c0_8 = arith.constant 0 : index
    %11 = vector.load %arg5[%c0_7, %c0_8] : memref<16x128xf32, #tpu.memory_space<vmem>>, vector<16x128xf32>
    tpu.vector_store %arg5[%c0_7, %c0_8], %10 {strides = array<i32>} : memref<16x128xf32, #tpu.memory_space<vmem>>, vector<16x128xf32>,
    return
  }
  func.func @transform_0(%arg0: i32, %arg1: i32) -> (i32, i32) {
    %c0_i32 = arith.constant 0 : i32
    %c0_i32_0 = arith.constant 0 : i32
    return %arg0, %c0_i32 : i32, i32
  }
  func.func @transform_1(%arg0: i32, %arg1: i32) -> (i32, i32) {
    %c0_i32 = arith.constant 0 : i32
    %c0_i32_0 = arith.constant 0 : i32
    return %arg1, %c0_i32 : i32, i32
  }
  func.func @transform_2(%arg0: i32, %arg1: i32) -> (i32, i32) {
    %c0_i32 = arith.constant 0 : i32
    %c0_i32_0 = arith.constant 0 : i32
    return %c0_i32, %arg1 : i32, i32
  }
  func.func @transform_3(%arg0: i32, %arg1: i32) -> (i32, i32) {
    %c0_i32 = arith.constant 0 : i32
    return %arg0, %arg1 : i32, i32
  }
}

</mosaic_0001>

<bundles_post_ra>
// kernel: tpu_custom_call.1
= control target key start
LH: loop header
LB: loop body
LE: loop exit
PB: predicated region body
PF: predicated region fallthrough
CT: control target
= control target key end

     0   :  { %vm40_vm0 = vcmask 130048   ;;  %s473_s0 = inlined_call_operand.vmem [shape: f32[16,16], index: 0, kind: input, shape index: {}]   ;;  %s474_s1 = inlined_call_operand.vmem [shape: f32[128,16], index: 1, kind: input, shape index: {}]   ;;  %s475_s2 = inlined_call_operand.vmem [shape: f32[1,128], index: 2, kind: input, shape index: {}]   ;;  %s476_s3 = inlined_call_operand.hbm [shape: f32[16,128], index: 3, kind: output, shape index: {}]  }
   0x1   :  { %v17_v0 = vld [vmem:[%s474_s1] sm:$0xff]  ;;  %v18_v1 = vld [vmem:[%s474_s1 + $0x8] sm:$0xff]  ;;  %v19_v2 = vld [vmem:[%s474_s1 + $0x10] sm:$0xff] }
   0x2   :  { %v266_v3 = vpack.c.bf16 %v18_v1, %v17_v0  ;;  %vm375_vm1 = vmpackc.low %vm40_vm0, %vm40_vm0  ;;  %v20_v5 = vld [vmem:[%s474_s1 + $0x18] sm:$0xff]  ;;  %v15_v7 = vld [vmem:[%s473_s0] sm:$0xff] }
   0x3   :  { %v272_v6 = vpack.c.bf16 %v20_v5, %v19_v2  ;;  %v21_v8 = vld [vmem:[%s474_s1 + $0x20] sm:$0xff]  ;;  %v22_v9 = vld [vmem:[%s474_s1 + $0x28] sm:$0xff]  ;;  %263 = vmatprep.mubr.msk.f32.mxu0 %vm40_vm0, %v15_v7 }
   0x4   :  { %268 = vmatprep.subr.msk.bf16.mxu0 %vm375_vm1, %v266_v3 }
   0x5   :  { %271 = vmatpush3.bf16.xpose.msk.msra.mxu0 %vm375_vm1, %v266_v3 }
   0x6   :  { %274 = vmatprep.subr.msk.bf16.mxu0 %vm375_vm1, %v272_v6 }
   0x7   :  { %8 = vsyncpa [#allocation3], 0  ;;  %v278_v10 = vpack.c.bf16 %v22_v9, %v21_v8  ;;  %v23_v11 = vld [vmem:[%s474_s1 + $0x30] sm:$0xff]  ;;  %v24_v12 = vld [vmem:[%s474_s1 + $0x38] sm:$0xff] }
   0x8   :  { %v284_v13 = vpack.c.bf16 %v24_v12, %v23_v11  ;;  %v25_v14 = vld [vmem:[%s474_s1 + $0x40] sm:$0xff]  ;;  %v26_v15 = vld [vmem:[%s474_s1 + $0x48] sm:$0xff]  ;;  %v27_v17 = vld [vmem:[%s474_s1 + $0x50] sm:$0xff] }
   0x9   :  { %v290_v16 = vpack.c.bf16 %v26_v15, %v25_v14  ;;  %v28_v18 = vld [vmem:[%s474_s1 + $0x58] sm:$0xff]  ;;  %v29_v20 = vld [vmem:[%s474_s1 + $0x60] sm:$0xff]  ;;  %v30_v21 = vld [vmem:[%s474_s1 + $0x68] sm:$0xff] }
   0xa   :  { %v296_v19 = vpack.c.bf16 %v28_v18, %v27_v17  ;;  %v302_v22 = vpack.c.bf16 %v30_v21, %v29_v20  ;;  %v31_v23 = vld [vmem:[%s474_s1 + $0x70] sm:$0xff]  ;;  %v32_v24 = vld [vmem:[%s474_s1 + $0x78] sm:$0xff]  ;;  %v16_v26 = vld [vmem:[%s473_s0 + $0x8] sm:$0xff]  ;;  %s341_s1 = smov [#allocation2]  }
   0xb   :  { %v308_v25 = vpack.c.bf16 %v32_v24, %v31_v23  ;;  %v194_v27 = vld [vmem:[%s475_s2] ss:$0 sm:$0xff]  ;;  %s183_s23 = sshll.u32 %s341_s1, 4  ;;  %s184_s23 = int_to_ptr.vmem [resolvable:$true] %s183_s23 }
   0xc   :  { %s317_s0 = scalar_lea.vmem %s184_s23, 256  ;;  %p322_p1 = scmp.lt.s32.totalorder %s184_s23, %s184_s23 }
   0xd   :  { %277 = vmatpush3.bf16.xpose.msk.msra.mxu0 %vm375_vm1, %v272_v6  ;;  %p318_p0 = scmp.ne.s32.totalorder %s184_s23, %s317_s0  ;;  %p323_p2 = scmp.lt.s32.totalorder %s317_s0, %s317_s0 }
   0xe   :  { %280 = vmatprep.subr.msk.bf16.mxu0 %vm375_vm1, %v278_v10 }
   0xf   :  { %p324_p3 = por %p323_p2, %p322_p1 }
  0x11   :  { %p325_p4 = pnand %p324_p3, %p318_p0 }
  0x15   :  { %283 = vmatpush3.bf16.xpose.msk.msra.mxu0 %vm375_vm1, %v278_v10 }
  0x16   :  { %286 = vmatprep.subr.msk.bf16.mxu0 %vm375_vm1, %v284_v13 }
  0x1d   :  { %289 = vmatpush3.bf16.xpose.msk.msra.mxu0 %vm375_vm1, %v284_v13 }
  0x1e   :  { %292 = vmatprep.subr.msk.bf16.mxu0 %vm375_vm1, %v290_v16 }
  0x25   :  { %295 = vmatpush3.bf16.xpose.msk.msra.mxu0 %vm375_vm1, %v290_v16 }
  0x26   :  { %298 = vmatprep.subr.msk.bf16.mxu0 %vm375_vm1, %v296_v19 }
  0x2d   :  { %301 = vmatpush3.bf16.xpose.msk.msra.mxu0 %vm375_vm1, %v296_v19 }
  0x2e   :  { %304 = vmatprep.subr.msk.bf16.mxu0 %vm375_vm1, %v302_v22 }
  0x35   :  { %307 = vmatpush3.bf16.xpose.msk.msra.mxu0 %vm375_vm1, %v302_v22 }
  0x36   :  { %310 = vmatprep.subr.msk.bf16.mxu0 %vm375_vm1, %v308_v25 }
  0x3d   :  { %313 = vmatpush3.bf16.xpose.msk.msra.mxu0 %vm375_vm1, %v308_v25 }
  0x44   :  { %264 = vmatmul.mubr.msk.f32.vlgmr.msra.gmra.mrb[0].mxu0 %vm40_vm0, %v16_v26 }
 0x117   :  { %v265_v28 = vpop.f32.mrb[0].mxu0 }
 0x118   :  { %v167_v29 = vadd.f32 %v265_v28, %v194_v27  ;;  %v161_v30 = vpop.f32.mrb[1].mxu0 }
 0x119   :  { %v162_v31 = vadd.f32 %v194_v27, %v161_v30 }
 0x11a   :  { %vm171_vm2 = vcmp.ge.f32.partialorder %v167_v29, 0.0  ;;  %v173_v32 = vmul.f32 9.1, %v167_v29 }
 0x11b   :  { %vm170_vm3 = vcmp.ge.f32.partialorder %v162_v31, 0.0  ;;  %v172_v33 = vmul.f32 9.1, %v162_v31 }
 0x11c   :  { %v175_v34 = vsel %vm171_vm2, %v167_v29, %v173_v32 }
 0x11d   :  { %177 = vst [vmem:[#allocation2 + $0x8] sm:$0xff] %v175_v34  ;;  %v174_v35 = vsel %vm170_vm3, %v162_v31, %v172_v33 }
 0x11e   :  { %176 = vst [vmem:[#allocation2] sm:$0xff] %v174_v35 }
 0x11f   :  { %328 = shalt.err (!%p325_p4)
}
 0x120   :  { %s329_s25 = scalar_lea.hbm %s476_s3, 256 }
 0x121   :  { %p330_p5 = scmp.ne.s32.totalorder %s476_s3, %s329_s25  ;;  %p333_p6 = scmp.lt.u32.totalorder %s329_s25, %s476_s3 }
 0x123   :  { %p335_p7 = pnand %p333_p6, %p330_p5 }
 0x125   :  { %338 = shalt.err (!%p335_p7)
}
 0x126   :  { %s342_s30 = smov 128   ;;  %s343_s4 = smov 8  }
 0x127   :  { %189 = dma.vmem_to_hbm [thread:$0]  %s184_s23, 256, %s476_s3, [#allocation3], %s342_s30, %s342_s30, %s343_s4  }
 0x128   :  { %339 = dma.done.wait [#allocation3], 256  }
 0x129   :  { %340 = vsyncadd [#allocation3], 4294967040 }
 0x12a   :  { %193 = vsyncpa [#allocation3], 1 }

</bundles_post_ra>
